<compile_context>
chip_gen: v7x
topology: tpu7x:2x2x1
jax: 0.10.0
libtpu: 0.0.40
codegen_flags: <defaults>
</compile_context>

<pallas_src>
import functools
import math

import jax
import jax.numpy as jnp
from jax.experimental import pallas as pl
from jax.experimental.pallas import tpu as pltpu


def _lexp_kernel(mean_ref, ah_ref, aw_ref, x_ref, o_ref, *, inv_scale):
    """Per-block partial sum of (pooled - E)^2.

    mean_ref : SMEM (1,) f32           well-exposedness level E (scalar prefetch)
    ah_ref   : VMEM (hp, c*h)          exact 0/1, resident: channel-mean + H pool
    aw_ref   : VMEM (wt, wt//p) f32    exact 0/1, resident: W pool
    x_ref    : VMEM (bt, c*h, wt)      input block
    o_ref    : VMEM (8, 128) f32       lane-dense per-block partial sum
    """
    bt = x_ref.shape[0]
    ah = ah_ref[...]                       # loaded once per grid step
    aw = aw_ref[...]
    e = mean_ref[0]

    def body(i, acc):
        xi = x_ref[i]                                            # (c*h, wt)
        # Fused channel-mean + H pooling: contract the big c*h axis on the
        # MXU in the input dtype, accumulate in f32.
        t = jnp.dot(ah, xi, preferred_element_type=jnp.float32)  # (hp, wt) f32
        # W pooling: small all-f32 matmul on already channel/H-reduced data.
        pooled = jnp.dot(t, aw, preferred_element_type=jnp.float32)  # (hp, wpt)
        d = pooled * jnp.float32(inv_scale) - e                  # exact f32 scale
        return acc + jnp.sum(d * d)

    acc = jax.lax.fori_loop(0, bt, body,
                            jnp.zeros((8, 128), jnp.float32),
                            unroll=bt <= 8)
    # One lane-dense (8, 128) tile per grid block -> no carried state, both
    # grid axes stay "parallel"; the wrapper reduces the partials in f32.
    o_ref[...] = acc


def lexp_loss(x, patch_size, mean_val, *, target_block_bytes=None):
    b, c, h, w = x.shape
    p = int(patch_size)
    hp, wp = h // p, w // p

    # Compute dtype: bf16 inputs stay on the native bf16 MXU path; everything
    # else runs in f32.
    if x.dtype == jnp.bfloat16:
        cdt = jnp.bfloat16
    else:
        cdt = jnp.float32
        if x.dtype != jnp.float32:
            x = x.astype(jnp.float32)
    itemsize = jnp.dtype(x.dtype).itemsize
    ch = c * h

    try:
        vmem_cap = int(pltpu.get_tpu_info().vmem_capacity_bytes)
    except Exception:
        vmem_cap = 64 << 20                # v7x per-core VMEM (smallest current)
    if target_block_bytes is None:
        target_block_bytes = int(min(8 << 20, vmem_cap // 8))

    # --- W tiling: tiles must be patch-aligned and lane-dense (128) ----------
    lcm = 128 * p // math.gcd(128, p)
    nw, wt = 1, w
    if ch * w * itemsize > target_block_bytes and w % lcm == 0:
        base = w // lcm                    # finest lane-dense, patch-aligned tiling
        nw = base
        for cand in range(1, base + 1):    # fewest tiles whose slab fits the target
            if base % cand == 0 and ch * (w // cand) * itemsize <= target_block_bytes:
                nw = cand
                break
        wt = w // nw
    # TODO(synk): when w is large but not a multiple of lcm(128, p) we fall back
    # to one full-width block; a masked ragged W tile (or splitting the c*h
    # contraction over an 'arbitrary' grid axis) would bound VMEM on v7x.
    wpt = wt // p

    # --- batch blocking -------------------------------------------------------
    per_img = ch * wt * itemsize
    bt = max(1, min(b, target_block_bytes // max(per_img, 1)))
    while b % bt != 0:                     # keep the grid exact (no ragged block)
        bt -= 1
    nb = b // bt
    # TODO(synk): a ragged last batch block (pl.when mask) would avoid bt
    # collapsing toward 1 when b has no divisor near the cap.
    if nb * nw == 1 and b > 1:             # give v7x's second TensorCore work
        bt = b // 2
        while b % bt != 0:
            bt -= 1
        nb = b // bt

    x3 = x.reshape(b, ch, w)               # free reshape: fold channels into rows

    # --- pooling matrices: built ONCE here, exact 0/1 entries -----------------
    # ah[i, k] = 1  iff  (k % h) // p == i   (rows past hp*p match nothing,
    # reproducing AvgPool2d's truncation); channel mean is fused by summing the
    # c*h axis and scaling by 1/(c*p*p) afterwards in f32.
    kk = jnp.arange(ch, dtype=jnp.int32)
    ii = jnp.arange(hp, dtype=jnp.int32)
    ah = ((kk[None, :] % h) // p == ii[:, None]).astype(cdt)        # (hp, c*h)
    # aw[k, j] = 1  iff  k // p == j   (same truncation along W)
    kw = jnp.arange(wt, dtype=jnp.int32)
    jj = jnp.arange(wpt, dtype=jnp.int32)
    aw = (kw[:, None] // p == jj[None, :]).astype(jnp.float32)      # (wt, wt//p)

    mean_arr = jnp.asarray(mean_val, jnp.float32).reshape((1,))
    inv_scale = 1.0 / float(c * p * p)

    # --- VMEM budgeting -------------------------------------------------------
    cdt_size = jnp.dtype(cdt).itemsize
    need = (2 * bt * per_img                         # double-buffered x blocks
            + 2 * hp * ch * cdt_size                 # resident AH
            + 2 * wt * wpt * 4                       # resident AW
            + 2 * (hp * wt + hp * wpt + 8 * 128) * 4  # f32 temporaries / output
            + (2 << 20))                             # margin
    vmem_limit = int(min(max(need, 16 << 20),
                         max(vmem_cap - (4 << 20), 16 << 20)))

    flops = 2 * b * hp * w * (ch + wpt)
    bytes_accessed = (b * ch * w * itemsize + hp * ch * cdt_size
                      + wt * wpt * 4 + nb * nw * 8 * 128 * 4)

    kernel = functools.partial(_lexp_kernel, inv_scale=inv_scale)

    out = pl.pallas_call(
        kernel,
        out_shape=jax.ShapeDtypeStruct((nb * 8, nw * 128), jnp.float32),
        grid_spec=pltpu.PrefetchScalarGridSpec(
            num_scalar_prefetch=1,                   # mean_val lives in SMEM
            grid=(nb, nw),
            in_specs=[
                pl.BlockSpec((hp, ch), lambda i, j, m: (0, 0)),       # AH resident
                pl.BlockSpec((wt, wpt), lambda i, j, m: (0, 0)),      # AW resident
                pl.BlockSpec((bt, ch, wt), lambda i, j, m: (i, 0, j)),
            ],
            out_specs=pl.BlockSpec((8, 128), lambda i, j, m: (i, j)),
        ),
        compiler_params=pltpu.CompilerParams(
            dimension_semantics=("parallel", "parallel"),
            vmem_limit_bytes=vmem_limit,
        ),
        cost_estimate=pl.CostEstimate(
            flops=int(flops),
            transcendentals=0,
            bytes_accessed=int(bytes_accessed),
        ),
    )(mean_arr, ah, aw, x3)

    # One scalar per grid block, reduced in f32 on the host-side graph.
    partials = out.reshape(nb, 8, nw, 128)[:, 0, :, 0]
    return jnp.sum(partials) / jnp.float32(b * hp * wp)


def lexp_loss_ref(x, patch_size, mean_val):
    # Pure-JAX reference (mirrors the PyTorch forward).
    b, c, h, w = x.shape
    xm = jnp.mean(x, axis=1, keepdims=True)
    hp, wp = h // patch_size, w // patch_size
    pooled = jnp.mean(
        xm[:, :, : hp * patch_size, : wp * patch_size]
        .reshape(b, 1, hp, patch_size, wp, patch_size),
        axis=(3, 5),
    )
    return jnp.mean((pooled - mean_val) ** 2)


if __name__ == "__main__":
    patch_size = 4
    mean_val = 0.6

    key = jax.random.PRNGKey(0)
    x = jax.random.uniform(key, (2, 4, 16, 16), dtype=jnp.float32)

    out = lexp_loss(x, patch_size, mean_val)
    out = jax.block_until_ready(out)

    ref = lexp_loss_ref(x, patch_size, mean_val)
    assert jnp.allclose(out, ref, rtol=1e-5, atol=1e-6), (out, ref)

    print("KERNEL_OK")
</pallas_src>

<mosaic_0001>
module attributes {stable_mosaic.version = 11 : i64} {
  func.func @_lexp_kernel(%arg0: i32, %arg1: i32, %arg2: memref<1xf32, #tpu.memory_space<smem>>, %arg3: memref<4x64xf32, #tpu.memory_space<vmem>>, %arg4: memref<16x4xf32, #tpu.memory_space<vmem>>, %arg5: memref<1x64x16xf32, #tpu.memory_space<vmem>>, %arg6: memref<8x128xf32, #tpu.memory_space<vmem>>) attributes {dimension_semantics = [#tpu.dimension_semantics<parallel>, #tpu.dimension_semantics<parallel>], iteration_bounds = array<i64: 2, 1>, scalar_prefetch = 1 : i64, scratch_operands = 0 : i64, tpu.core_type = #tpu.core_type<tc>, window_params = [{pipeline_mode = #tpu.pipeline_mode<synchronous>, transform_indices = @transform_0, window_bounds = array<i64: 4, 64>}, {pipeline_mode = #tpu.pipeline_mode<synchronous>, transform_indices = @transform_1, window_bounds = array<i64: 16, 4>}, {transform_indices = @transform_2, window_bounds = array<i64: 1, 64, 16>}, {transform_indices = @transform_3, window_bounds = array<i64: 8, 128>}]} {
    %c0 = arith.constant 0 : index
    %c0_0 = arith.constant 0 : index
    %0 = vector.load %arg3[%c0, %c0_0] : memref<4x64xf32, #tpu.memory_space<vmem>>, vector<4x64xf32>
    %c0_1 = arith.constant 0 : index
    %c0_2 = arith.constant 0 : index
    %1 = vector.load %arg4[%c0_1, %c0_2] : memref<16x4xf32, #tpu.memory_space<vmem>>, vector<16x4xf32>
    %c0_3 = arith.constant 0 : index
    %2 = memref.load %arg2[%c0_3] : memref<1xf32, #tpu.memory_space<smem>>
    %cst = arith.constant 0.000000e+00 : f32
    %3 = vector.broadcast %cst : f32 to vector<8x128xf32>
    %c0_i32 = arith.constant 0 : i32
    %4 = arith.index_cast %c0_i32 : i32 to index
    %c0_4 = arith.constant 0 : index
    %c0_5 = arith.constant 0 : index
    %5 = vector.load %arg5[%4, %c0_4, %c0_5] : memref<1x64x16xf32, #tpu.memory_space<vmem>>, vector<1x64x16xf32>
    %6 = vector.shape_cast %5 : vector<1x64x16xf32> to vector<64x16xf32>
    %cst_6 = arith.constant dense<0.000000e+00> : vector<4x16xf32>
    %7 = tpu.matmul %0, %6, %cst_6 {dimension_numbers = #tpu.dot_dimension_numbers<[1], [0], [0], [1], [0, 0, 1, 1], [], []>} : vector<4x64xf32>, vector<64x16xf32>, vector<4x16xf32> -> vector<4x16xf32>
    %cst_7 = arith.constant dense<0.000000e+00> : vector<4x4xf32>
    %8 = tpu.matmul %7, %1, %cst_7 {dimension_numbers = #tpu.dot_dimension_numbers<[1], [0], [0], [1], [0, 0, 1, 1], [], []>} : vector<4x16xf32>, vector<16x4xf32>, vector<4x4xf32> -> vector<4x4xf32>
    %cst_8 = arith.constant 1.562500e-02 : f32
    %9 = vector.broadcast %cst_8 : f32 to vector<4x4xf32>
    %10 = arith.mulf %8, %9 : vector<4x4xf32>
    %11 = vector.broadcast %2 : f32 to vector<4x4xf32>
    %12 = arith.subf %10, %11 : vector<4x4xf32>
    %13 = arith.mulf %12, %12 : vector<4x4xf32>
    %14 = vector.shape_cast %13 : vector<4x4xf32> to vector<1x4x4xf32>
    %cst_9 = arith.constant dense<0.000000e+00> : vector<1xf32>
    %15 = vector.multi_reduction <add>, %14, %cst_9 [1, 2] : vector<1x4x4xf32> to vector<1xf32>
    %16 = vector.shape_cast %15 : vector<1xf32> to vector<1x1x1xf32>
    %17 = vector.extract %16[0, 0, 0] : f32 from vector<1x1x1xf32>
    %18 = vector.broadcast %17 : f32 to vector<8x128xf32>
    %19 = arith.addf %3, %18 : vector<8x128xf32>
    %c1_i32 = arith.constant 1 : i32
    %c0_10 = arith.constant 0 : index
    %c0_11 = arith.constant 0 : index
    %20 = vector.load %arg6[%c0_10, %c0_11] : memref<8x128xf32, #tpu.memory_space<vmem>>, vector<8x128xf32>
    tpu.vector_store %arg6[%c0_10, %c0_11], %19 {strides = array<i32>} : memref<8x128xf32, #tpu.memory_space<vmem>>, vector<8x128xf32>,
    return
  }
  func.func @transform_0(%arg0: i32, %arg1: i32, %arg2: memref<1xf32, #tpu.memory_space<smem>>) -> (i32, i32) {
    %c0_i32 = arith.constant 0 : i32
    %c0_i32_0 = arith.constant 0 : i32
    %c0_i32_1 = arith.constant 0 : i32
    return %c0_i32, %c0_i32_0 : i32, i32
  }
  func.func @transform_1(%arg0: i32, %arg1: i32, %arg2: memref<1xf32, #tpu.memory_space<smem>>) -> (i32, i32) {
    %c0_i32 = arith.constant 0 : i32
    %c0_i32_0 = arith.constant 0 : i32
    %c0_i32_1 = arith.constant 0 : i32
    return %c0_i32, %c0_i32_0 : i32, i32
  }
  func.func @transform_2(%arg0: i32, %arg1: i32, %arg2: memref<1xf32, #tpu.memory_space<smem>>) -> (i32, i32, i32) {
    %c0_i32 = arith.constant 0 : i32
    %c0_i32_0 = arith.constant 0 : i32
    return %arg0, %c0_i32, %arg1 : i32, i32, i32
  }
  func.func @transform_3(%arg0: i32, %arg1: i32, %arg2: memref<1xf32, #tpu.memory_space<smem>>) -> (i32, i32) {
    %c0_i32 = arith.constant 0 : i32
    return %arg0, %arg1 : i32, i32
  }
}

</mosaic_0001>

<bundles_post_ra>
// kernel: tpu_custom_call.1
= control target key start
LH: loop header
LB: loop body
LE: loop exit
PB: predicated region body
PF: predicated region fallthrough
CT: control target
= control target key end

     0   :  { %s824_s0 = inlined_call_operand.<no memory space> [shape: f32[1], index: 0, kind: input, shape index: {}]   ;;  %s825_s1 = inlined_call_operand.vmem [shape: f32[4,64], index: 1, kind: input, shape index: {}]   ;;  %s826_s2 = inlined_call_operand.vmem [shape: f32[16,4], index: 2, kind: input, shape index: {}]   ;;  %s827_s3 = inlined_call_operand.vmem [shape: f32[2,64,16], index: 3, kind: input, shape index: {}]   ;;  %s828_s4 = inlined_call_operand.hbm [shape: f32[16,128], index: 4, kind: output, shape index: {}]  }
   0x1   :  { %9 = sst [smem:[#allocation3]] %s824_s0 }
   0x2   :  { %10 = vsyncpa [#allocation5], 0 }
   0x3   :  { %12 = vsyncpa [#allocation5 + $0x1], 0  ;;  %s703_s17 = smov 0   ;;  %s705_s18 = smov 0  }
   0x4   :  { %s707_s19 = smov 0   ;;  %s709_s20 = smov 0  }
   0x5   :  { %s711_s21 = smov 0   ;;  %s713_s22 = smov 0  }
   0x6 LB: > { %s463_s0 = sadd.s32 4294967295, %s669_s22   ;;  %s464_s23 = sadd.s32 4294967294, %s669_s22   ;;  %s669_s22 = sphi %s713_s22, %s18_s22   ;;  %s665_s21 = sphi %s711_s21, %s835_s21   ;;  %s661_s20 = sphi %s709_s20, %s834_s20   ;;  %s657_s19 = sphi %s707_s19, %s833_s19   ;;  %s653_s18 = sphi %s705_s18, %s832_s18   ;;  %s649_s17 = sphi %s703_s17, %s831_s17  }
   0x7   : > { %s30_s24 = sadd.s32 1, %s665_s21  ;;  %s109_s25 = sadd.s32 1, %s657_s19 }
   0x8   : > { %p32_p0 = scmp.ge.s32.totalorder %s30_s24, 2  ;;  %p119_p1 = scmp.ne.s32.totalorder %s657_s19, %s653_s18 }
   0x9   : > { %p120_p2 = scmp.eq.s32.totalorder %s463_s0, 1  ;;  %p125_p3 = scmp.ne.s32.totalorder %s653_s18, %s649_s17 }
   0xa   : > { %s837_s24 = smov (%p32_p0, %s30_s24), 0  ;;  %p126_p5 = scmp.eq.s32.totalorder %s464_s23, 1 }
   0xb   : > { %p743_p4 = por %p120_p2, %p119_p1  ;;  %s104_s27 = ssub.s32 %s665_s21, %s837_s24 }
   0xc   : > { %p467_p6 = scmp.ge.s32.totalorder %s669_s22, 1  ;;  %p107_p7 = scmp.eq.s32.totalorder %s104_s27, 0 }
   0xd   : > { %p750_p8 = por %p126_p5, %p125_p3  ;;  %p161_p9 = scmp.lt.s32.totalorder %s669_s22, 3 }
   0xe   : > { %s756_s29 = scalar_select %p107_p7, %s657_s19, %s109_s25  }
   0xf   : > { %p162_p10 = pnand %p467_p6, %p161_p9 }
  0x10   : > { %p188_p11 = scmp.lt.s32.totalorder (!%p162_p10), %s661_s20, 1  ;;  %v671_v0 = vmov (!%p162_p10), 0.0|0.0   ;;  %vm672_vm0 = vmmov (!%p162_p10), 0   ;;  %v673_v1 = vmov (!%p162_p10), 0.0   ;;  %v197_v2 = vld [vmem:[%s826_s2] sm:$0xff] (!%p162_p10)  ;;  %v198_v3 = vld [vmem:[%s826_s2 + $0x8] sm:$0xff] (!%p162_p10) }
  0x11   : > { %165 = sbr.rel (%p162_p10) target bundleno = 696 (0x2b8), region = 32  ;;  %516 = vmatprep.subr.bf16.mxu0 (!%p162_p10), %v671_v0  ;;  %506 = vmatprep.mubr.msk.f32.mxu0 (!%p162_p10), %vm672_vm0, %v673_v1  ;;  %v529_v4 = vpack.c.bf16 (!%p162_p10), %v198_v3, %v197_v2  ;;  %v196_v17 = vld [vmem:[%s825_s1] sm:$0xf] (!%p162_p10)  ;;  %vm208_vm1 = vcmask (!%p162_p10), 523264   ;;  %vm282_vm2 = vcmask (!%p162_p10), 130048   ;;  %s199_s15 = sld [smem:[#allocation3]] (!%p162_p10) }
  0x12   : > { %528 = vmatprep.subr.bf16.mxu1 (!%p162_p10), %v671_v0  ;;  %513 = vmatprep.mubr.msk.f32.mxu1 (!%p162_p10), %vm672_vm0, %v673_v1  ;;  %vm360_vm3 = vcmask (!%p162_p10), 27648   ;;  %s185_s16 = sand.u32 (!%p162_p10), 1, %s653_s18   ;;  %s474_s27 = sshll.u32 (!%p162_p10), %s661_s20, 7 }
  0x13   : > { %530 = vmatpush3.bf16.msra.mxu1 (!%p162_p10), %v529_v4  ;;  %s468_s0 = sshll.u32 (!%p162_p10), %s185_s16, 3  ;;  %s779_s7 = scalar_lea.hbm (!%p162_p10), %s828_s4, %s474_s27 }
  0x14   : > { %s187_s23 = scalar_lea.vmem (!%p162_p10), [#allocation4], %s468_s0 }
  0x15   : > { %s389_s25 = sshll.u32 (!%p162_p10), %s187_s23, 4  ;;  %s774_s25 = int_to_ptr.vmem [resolvable:$true] %s389_s25 }
  0x17   : > { %v357_v21 = vstv (!%p162_p10), %s199_s15 }
  0x18   : > { %s189_s8 = scalar_select %p188_p11, %s661_s20, 1 }
  0x19   : > { %s674_s20 = smov [#allocation4]  }
  0x1a   : > { %s477_s9 = sshll.u32 %s189_s8, 6  ;;  %s375_s8 = scalar_lea.sflag [#allocation5], %s185_s16 }
  0x1b   : > { %s195_s12 = scalar_lea.vmem %s827_s3, %s477_s9  ;;  %s591_s9 = scalar_lea.vmem %s774_s25, 128 }
  0x1c   : > { %v200_v5 = vld [vmem:[%s195_s12] sm:$0xff]  ;;  %v201_v6 = vld [vmem:[%s195_s12 + $0x8] sm:$0xff]  ;;  %v202_v7 = vld [vmem:[%s195_s12 + $0x10] sm:$0xff]  ;;  %p592_p12 = scmp.ne.s32.totalorder %s774_s25, %s591_s9  ;;  %s595_s10 = sshll.u32 %s674_s20, 4  ;;  %s596_s10 = int_to_ptr.vmem [resolvable:$false] %s595_s10 }
  0x1d   : > { %v517_v8 = vpack.c.bf16 %v201_v6, %v200_v5  ;;  %v203_v9 = vld [vmem:[%s195_s12 + $0x18] sm:$0xff]  ;;  %v204_v11 = vld [vmem:[%s195_s12 + $0x20] sm:$0xff]  ;;  %v205_v12 = vld [vmem:[%s195_s12 + $0x28] sm:$0xff]  ;;  %s597_s11 = scalar_lea.vmem %s596_s10, 256  ;;  %p598_p1 = scmp.lt.s32.totalorder %s774_s25, %s596_s10 }
  0x1e   : > { %v520_v10 = vpack.c.bf16 %v203_v9, %v202_v7  ;;  %v523_v13 = vpack.c.bf16 %v205_v12, %v204_v11  ;;  %v206_v14 = vld [vmem:[%s195_s12 + $0x30] sm:$0xff]  ;;  %v207_v15 = vld [vmem:[%s195_s12 + $0x38] sm:$0xff]  ;;  %p593_p13 = pnand %p592_p12, %p743_p4  ;;  %p599_p2 = scmp.lt.s32.totalorder %s597_s11, %s591_s9 }
  0x1f   : > { %518 = vmatpush3.bf16.msra.mxu0 %v517_v8  ;;  %v526_v16 = vpack.c.bf16 %v207_v15, %v206_v14 }
  0x20   : > { %519 = vmatprep.subr.bf16.mxu0 %v671_v0  ;;  %p594_p0 = pneg %p593_p13  ;;  %p600_p3 = por %p599_p2, %p598_p1 }
  0x22   : > { %p601_p5 = pnand %p600_p3, %p594_p0 }
  0x23   : > { %521 = vmatpush3.bf16.msra.mxu0 %v520_v10 }
  0x24   : > { %522 = vmatprep.subr.bf16.mxu0 %v671_v0 }
  0x27   : > { %524 = vmatpush3.bf16.msra.mxu0 %v523_v13 }
  0x28   : > { %525 = vmatprep.subr.bf16.mxu0 %v671_v0 }
  0x2b   : > { %527 = vmatpush3.bf16.msra.mxu0 %v526_v16 }
  0x2e   : > { %507 = vmatmul.mubr.msk.f32.vlgmr.msra.gmra.mrb[0].mxu0 %vm208_vm1, %v196_v17 }
 0x101   : > { %v278_v18 = vpop.f32.mrb[0].mxu0 }
 0x102   : > { %v508_v19 = vpop.f32.mrb[1].mxu0  ;;  %514 = vmatmul.mubr.msk.f32.vlgmr.msra.gmra.mrb[0].mxu1 %vm282_vm2, %v278_v18 }
 0x1d5   : > { %v352_v20 = vpop.f32.mrb[0].mxu1 }
 0x1d6   : > { %v356_v22 = vmul.f32 0.015625, %v352_v20  ;;  %v515_v23 = vpop.f32.mrb[1].mxu1 }
 0x1d8   : > { %v358_v24 = vsub.f32 %v356_v22, %v357_v21 }
 0x1da   : > { %v359_v25 = vmul.f32 %v358_v24, %v358_v24 }
 0x1dc   : > { %v361_v26 = vsel %vm360_vm3, %v359_v25, 0.0 }
 0x1dd   : > { %362 = vadd.xlane.f32.xlu0 %v361_v26 }
 0x26a   : > { %v363_v27 = vpop.xlane.xlu0 %362 }
 0x26b   : > { %v364_v28 = vrot.slane %v363_v27, 4 }
 0x26d   : > { %v365_v29 = vadd.f32 %v364_v28, %v363_v27 }
 0x26f   : > { %v366_v30 = vrot.slane %v365_v29, 2 }
 0x271   : > { %v367_v31 = vadd.f32 %v366_v30, %v365_v29 }
 0x273   : > { %v368_v32 = vrot.slane %v367_v31, 1 }
 0x275   : > { %v369_v33 = vadd.f32 %v368_v32, %v367_v31 }
 0x277   : > { %531 = vpush %v369_v33 }
 0x2a8   : > { %s532_s30 = spop %531 }
 0x2a9   : > { %v371_v34 = vstv %s532_s30 }
 0x2aa   : > { %373 = vst [vmem:[%s187_s23] sm:$0xff] %v371_v34 }
 0x2ab   : > { %604 = shalt.err (!%p601_p5)
}
 0x2ac   : > { %s605_s12 = scalar_lea.hbm %s779_s7, 128  ;;  %s609_s15 = scalar_lea.hbm %s828_s4, 256 }
 0x2ad   : > { %p606_p6 = scmp.ne.s32.totalorder %s779_s7, %s605_s12  ;;  %p610_p10 = scmp.lt.u32.totalorder %s779_s7, %s828_s4 }
 0x2ae   : > { %p611_p11 = scmp.lt.u32.totalorder %s609_s15, %s605_s12  ;;  %p613_p13 = scmp.lt.u32.totalorder %s605_s12, %s779_s7 }
 0x2af   : > { %p607_p7 = pnand %p606_p6, %p743_p4 }
 0x2b0   : > { %p612_p12 = por %p611_p11, %p610_p10 }
 0x2b1   : > { %p608_p9 = pneg %p607_p7 }
 0x2b2   : > { %p614_p0 = por %p613_p13, %p612_p12 }
 0x2b4   : > { %p615_p1 = pnand %p614_p0, %p608_p9 }
 0x2b6   : > { %618 = shalt.err (!%p615_p1)
}
 0x2b7   : > { %533 = dma.vmem_to_hbm [thread:$0]  (%p743_p4), %s774_s25, 128, %s779_s7, %s375_s8  }
 0x2b8 PF: > { %p539_p2 = scmp.ge.s32.totalorder %s669_s22, 2  ;;  %s401_s23 = sand.u32 1, %s649_s17  }
 0x2b9   : > { %s402_s27 = scalar_lea.sflag [#allocation5], %s401_s23 }
 0x2ba   : > { %p536_p3 = pnand %p539_p2, %p750_p8 }
 0x2bc   : > { %644 = dma.done.wait (!%p536_p3), %s402_s27, 128  }
 0x2bd   : > { %646 = vsyncadd (!%p536_p3), %s402_s27, 4294967168  ;;  %s18_s22 = sadd.s32 1, %s669_s22   ;;  %s831_s17 = smov %s653_s18 }
 0x2be   : > { %p15_p5 = scmp.ge.s32.totalorder %s18_s22, 4   ;;  %s832_s18 = smov %s657_s19 }
 0x2bf   : > { %s833_s19 = smov %s756_s29  ;;  %s834_s20 = smov %s665_s21 }
 0x2c0   : > { %s835_s21 = smov %s837_s24  ;;  %17 = sbr.rel (!%p15_p5) target bundleno = 6 (0x6), region = 67 }
 0x2c7   :  { %407 = vsyncpa [#allocation5], 1 }
 0x2c8   :  { %409 = vsyncpa [#allocation5 + $0x1], 1 }

</bundles_post_ra>
